<compile_context>
chip_gen: v6e
topology: v6e:2x2x1
jax: 0.10.0
libtpu: 0.0.40
codegen_flags: <defaults>
</compile_context>

<pallas_src>
import functools
import math

import jax
import jax.numpy as jnp
from jax import lax
from jax.experimental import pallas as pl
from jax.experimental.pallas import tpu as pltpu


# ----------------------------------------------------------------------------
# helpers
# ----------------------------------------------------------------------------
def _pick_tile(dim, preferred):
    """Largest tile <= preferred that divides `dim` and is a multiple of 8.

    Falls back to the full dimension (always a legal block shape). Divisibility
    is required for the attention tiles so padded garbage never enters the
    softmax reduction."""
    if dim <= preferred:
        return dim
    t = (preferred // 8) * 8
    while t >= 8:
        if dim % t == 0:
            return t
        t -= 8
    return dim


# ----------------------------------------------------------------------------
# tiled linear (output projection) and fused QKV projection
# ----------------------------------------------------------------------------
def _linear_kernel(x_ref, w_ref, b_ref, o_ref):
    o_ref[...] = (
        jnp.dot(x_ref[...], w_ref[...], preferred_element_type=jnp.float32)
        + b_ref[...]
    ).astype(o_ref.dtype)


def pallas_linear(x2d, w, b, *, tile_m=256, tile_n=512):
    M, Din = x2d.shape
    Dout = w.shape[1]
    tm = min(M, tile_m)
    tn = min(Dout, tile_n)
    grid = (pl.cdiv(M, tm), pl.cdiv(Dout, tn))
    return pl.pallas_call(
        _linear_kernel,
        out_shape=jax.ShapeDtypeStruct((M, Dout), jnp.float32),
        grid=grid,
        in_specs=[
            pl.BlockSpec((tm, Din), lambda i, j: (i, 0)),
            pl.BlockSpec((Din, tn), lambda i, j: (0, j)),
            pl.BlockSpec((1, tn), lambda i, j: (0, j)),
        ],
        out_specs=pl.BlockSpec((tm, tn), lambda i, j: (i, j)),
        compiler_params=pltpu.CompilerParams(
            dimension_semantics=("parallel", "parallel")
        ),
    )(x2d, w, b.reshape(1, Dout))


def _qkv_kernel(xq_ref, xk_ref, xv_ref, wq_ref, wk_ref, wv_ref,
                bq_ref, bk_ref, bv_ref, oq_ref, ok_ref, ov_ref):
    oq_ref[...] = (
        jnp.dot(xq_ref[...], wq_ref[...], preferred_element_type=jnp.float32)
        + bq_ref[...]
    ).astype(oq_ref.dtype)
    ok_ref[...] = (
        jnp.dot(xk_ref[...], wk_ref[...], preferred_element_type=jnp.float32)
        + bk_ref[...]
    ).astype(ok_ref.dtype)
    ov_ref[...] = (
        jnp.dot(xv_ref[...], wv_ref[...], preferred_element_type=jnp.float32)
        + bv_ref[...]
    ).astype(ov_ref.dtype)


def pallas_qkv_proj(q2d, k2d, v2d, wq, wk, wv, bq, bk, bv,
                    *, tile_m=256, tile_n=512):
    M, Din = q2d.shape
    Dout = wq.shape[1]
    tm = min(M, tile_m)
    tn = min(Dout, tile_n)
    grid = (pl.cdiv(M, tm), pl.cdiv(Dout, tn))
    x_spec = pl.BlockSpec((tm, Din), lambda i, j: (i, 0))
    w_spec = pl.BlockSpec((Din, tn), lambda i, j: (0, j))
    b_spec = pl.BlockSpec((1, tn), lambda i, j: (0, j))
    o_spec = pl.BlockSpec((tm, tn), lambda i, j: (i, j))
    o_shape = jax.ShapeDtypeStruct((M, Dout), jnp.float32)
    return pl.pallas_call(
        _qkv_kernel,
        out_shape=(o_shape, o_shape, o_shape),
        grid=grid,
        in_specs=[x_spec, x_spec, x_spec,
                  w_spec, w_spec, w_spec,
                  b_spec, b_spec, b_spec],
        out_specs=(o_spec, o_spec, o_spec),
        compiler_params=pltpu.CompilerParams(
            dimension_semantics=("parallel", "parallel")
        ),
    )(q2d, k2d, v2d, wq, wk, wv,
      bq.reshape(1, Dout), bk.reshape(1, Dout), bv.reshape(1, Dout))


# ----------------------------------------------------------------------------
# attention kernels
#   q:    (B, Sq, H*depth)      -- read head slices via static lane slicing
#   k, v: (B, H, Sk, depth)
#   out:  (B, Sq, H*depth)      -- lane-dense slab, no merge transpose needed
# ----------------------------------------------------------------------------
def _attn_flash_kernel(q_ref, k_ref, v_ref, mask_ref, o_ref,
                       m_sc, l_sc, acc_sc, *, num_heads, depth, scale):
    ki = pl.program_id(2)

    @pl.when(ki == 0)
    def _():
        m_sc[...] = jnp.full_like(m_sc, -jnp.inf)
        l_sc[...] = jnp.zeros_like(l_sc)
        acc_sc[...] = jnp.zeros_like(acc_sc)

    neg_mask = mask_ref[...]                              # (tq, tk), additive
    for h in range(num_heads):
        lo, hi = h * depth, (h + 1) * depth
        q_h = q_ref[0, :, lo:hi] * scale                  # (tq, depth)
        k_h = k_ref[0, h]                                 # (tk, depth)
        v_h = v_ref[0, h]                                 # (tk, depth)
        s = lax.dot_general(q_h, k_h, (((1,), (1,)), ((), ())),
                            preferred_element_type=jnp.float32)
        s = s + neg_mask                                  # (tq, tk)
        m_prev = m_sc[h]                                  # (tq, 1)
        m_new = jnp.maximum(m_prev, jnp.max(s, axis=-1, keepdims=True))
        alpha = jnp.exp(m_prev - m_new)
        p = jnp.exp(s - m_new)
        l_sc[h] = alpha * l_sc[h] + jnp.sum(p, axis=-1, keepdims=True)
        acc_sc[h] = alpha * acc_sc[h] + lax.dot_general(
            p, v_h, (((1,), (0,)), ((), ())),
            preferred_element_type=jnp.float32)
        m_sc[h] = m_new

    @pl.when(ki == pl.num_programs(2) - 1)
    def _():
        for h in range(num_heads):
            lo, hi = h * depth, (h + 1) * depth
            o_ref[0, :, lo:hi] = (
                acc_sc[h] * pl.reciprocal(l_sc[h], approx=False)
            ).astype(o_ref.dtype)


def _attn_weights_kernel(q_ref, k_ref, v_ref, mask_ref, o_ref, w_ref,
                         *, num_heads, depth, scale):
    neg_mask = mask_ref[...]                              # (tq, Sk), additive
    for h in range(num_heads):
        lo, hi = h * depth, (h + 1) * depth
        q_h = q_ref[0, :, lo:hi] * scale                  # (tq, depth)
        k_h = k_ref[0, h]                                 # (Sk, depth)
        v_h = v_ref[0, h]                                 # (Sk, depth)
        s = lax.dot_general(q_h, k_h, (((1,), (1,)), ((), ())),
                            preferred_element_type=jnp.float32)
        s = s + neg_mask
        m = jnp.max(s, axis=-1, keepdims=True)
        e = jnp.exp(s - m)
        p = e * pl.reciprocal(jnp.sum(e, axis=-1, keepdims=True), approx=False)
        w_ref[0, h] = p
        o_ref[0, :, lo:hi] = lax.dot_general(
            p, v_h, (((1,), (0,)), ((), ())),
            preferred_element_type=jnp.float32).astype(o_ref.dtype)


def pallas_attention(q_bsd, kh, vh, neg_mask, num_heads, depth,
                     *, output_attentions=False, q_tile=128, kv_tile=256):
    B, Sq, D = q_bsd.shape
    Sk = kh.shape[2]
    scale = 1.0 / math.sqrt(depth)
    tq = _pick_tile(Sq, q_tile)

    if output_attentions:
        # Full-Sk softmax so the exact probabilities can be written out.
        kernel = functools.partial(_attn_weights_kernel, num_heads=num_heads,
                                   depth=depth, scale=scale)
        out_shapes = (
            jax.ShapeDtypeStruct((B, Sq, D), jnp.float32),
            jax.ShapeDtypeStruct((B, num_heads, Sq, Sk), jnp.float32),
        )
        return pl.pallas_call(
            kernel,
            out_shape=out_shapes,
            grid=(B, Sq // tq),
            in_specs=[
                pl.BlockSpec((1, tq, D), lambda b, qi: (b, qi, 0)),
                pl.BlockSpec((1, num_heads, Sk, depth), lambda b, qi: (b, 0, 0, 0)),
                pl.BlockSpec((1, num_heads, Sk, depth), lambda b, qi: (b, 0, 0, 0)),
                pl.BlockSpec((tq, Sk), lambda b, qi: (qi, 0)),
            ],
            out_specs=(
                pl.BlockSpec((1, tq, D), lambda b, qi: (b, qi, 0)),
                pl.BlockSpec((1, num_heads, tq, Sk), lambda b, qi: (b, 0, qi, 0)),
            ),
            compiler_params=pltpu.CompilerParams(
                dimension_semantics=("parallel", "parallel")),
        )(q_bsd, kh, vh, neg_mask)

    # No weights requested: KV-tiled online-softmax (flash) kernel.
    tk = _pick_tile(Sk, kv_tile)
    kernel = functools.partial(_attn_flash_kernel, num_heads=num_heads,
                               depth=depth, scale=scale)
    out = pl.pallas_call(
        kernel,
        out_shape=jax.ShapeDtypeStruct((B, Sq, D), jnp.float32),
        grid=(B, Sq // tq, Sk // tk),
        in_specs=[
            pl.BlockSpec((1, tq, D), lambda b, qi, ki: (b, qi, 0)),
            pl.BlockSpec((1, num_heads, tk, depth), lambda b, qi, ki: (b, 0, ki, 0)),
            pl.BlockSpec((1, num_heads, tk, depth), lambda b, qi, ki: (b, 0, ki, 0)),
            pl.BlockSpec((tq, tk), lambda b, qi, ki: (qi, ki)),
        ],
        out_specs=pl.BlockSpec((1, tq, D), lambda b, qi, ki: (b, qi, 0)),
        scratch_shapes=[
            pltpu.VMEM((num_heads, tq, 1), jnp.float32),      # running max
            pltpu.VMEM((num_heads, tq, 1), jnp.float32),      # running sum
            pltpu.VMEM((num_heads, tq, depth), jnp.float32),  # accumulator
        ],
        compiler_params=pltpu.CompilerParams(
            dimension_semantics=("parallel", "parallel", "arbitrary")),
    )(q_bsd, kh, vh, neg_mask)
    return out, None


# ----------------------------------------------------------------------------
# Module (glue in plain JAX, hot paths in Pallas)
# ----------------------------------------------------------------------------
class MultiHeadAttention:
    def __init__(self, d_model_size, num_heads, key, output_attentions=False):
        assert d_model_size % num_heads == 0
        self.output_attentions = output_attentions
        self.num_heads = num_heads
        self.d_model_size = d_model_size
        self.depth = d_model_size // num_heads

        ks = jax.random.split(key, 8)
        bound = 1.0 / math.sqrt(d_model_size)

        def init_w(k):  # stored as (in, out): forward computes x @ W + b
            return jax.random.uniform(
                k, (d_model_size, d_model_size), jnp.float32, -bound, bound)

        def init_b(k):
            return jax.random.uniform(
                k, (d_model_size,), jnp.float32, -bound, bound)

        self.Wq, self.bq = init_w(ks[0]), init_b(ks[1])
        self.Wk, self.bk = init_w(ks[2]), init_b(ks[3])
        self.Wv, self.bv = init_w(ks[4]), init_b(ks[5])
        self.Wd, self.bd = init_w(ks[6]), init_b(ks[7])

    def split_into_heads(self, x, batch_size):
        x = x.reshape(batch_size, -1, self.num_heads, self.depth)
        return jnp.transpose(x, (0, 2, 1, 3))

    def __call__(self, v, k, q, mask, layer_past=None,
                 attention_mask=None, head_mask=None):
        # TODO(synk): attention_mask / head_mask are not exercised here (the
        # None path), matching the default torch call in this setting.
        B = q.shape[0]
        D = self.d_model_size

        q2, k2, v2 = (t.reshape(-1, D) for t in (q, k, v))
        if q2.shape == k2.shape == v2.shape:
            qp, kp, vp = pallas_qkv_proj(q2, k2, v2,
                                         self.Wq, self.Wk, self.Wv,
                                         self.bq, self.bk, self.bv)
        else:
            qp = pallas_linear(q2, self.Wq, self.bq)
            kp = pallas_linear(k2, self.Wk, self.bk)
            vp = pallas_linear(v2, self.Wv, self.bv)

        qp = qp.reshape(q.shape)                       # stays (B, Sq, D)
        kh = self.split_into_heads(kp.reshape(k.shape), B)   # (B, H, Sk, depth)
        vh = self.split_into_heads(vp.reshape(v.shape), B)

        if layer_past is not None:
            past_key, past_value = layer_past[0], layer_past[1]
            kh = jnp.concatenate((past_key, kh), axis=-2)
            vh = jnp.concatenate((past_value, vh), axis=-2)
        present = jnp.stack((kh, vh))

        Sq, Sk = qp.shape[1], kh.shape[2]
        if mask is None:
            neg_mask = jnp.zeros((Sq, Sk), jnp.float32)
        else:
            neg_mask = mask.astype(jnp.float32) * (-10000.0)

        attn_out, attn_weights = pallas_attention(
            qp, kh, vh, neg_mask, self.num_heads, self.depth,
            output_attentions=self.output_attentions)

        # attn_out is already (B, Sq, H*depth): no merge transpose needed.
        output = pallas_linear(
            attn_out.reshape(-1, D), self.Wd, self.bd
        ).reshape(B, Sq, D)

        outputs = (output, present)
        if self.output_attentions:
            outputs = outputs + (attn_weights,)
        return outputs


# ----------------------------------------------------------------------------
# Pure-JAX reference (mirrors the torch forward) for a sanity check
# ----------------------------------------------------------------------------
def reference_forward(mha, v, k, q, mask):
    B, S, D = q.shape
    qp = q.reshape(-1, D) @ mha.Wq + mha.bq
    kp = k.reshape(-1, D) @ mha.Wk + mha.bk
    vp = v.reshape(-1, D) @ mha.Wv + mha.bv

    def split(x):
        return jnp.transpose(
            x.reshape(B, S, mha.num_heads, mha.depth), (0, 2, 1, 3))

    qh, kh, vh = split(qp), split(kp), split(vp)
    logits = jnp.einsum("bhqd,bhkd->bhqk", qh, kh) / math.sqrt(mha.depth)
    logits = logits + mask * (-10000.0)
    w = jax.nn.softmax(logits, axis=-1)
    o = jnp.einsum("bhqk,bhkd->bhqd", w, vh)
    o = jnp.transpose(o, (0, 2, 1, 3)).reshape(B, S, D)
    out = o.reshape(-1, D) @ mha.Wd + mha.bd
    return out.reshape(B, S, D), jnp.stack((kh, vh)), w


if __name__ == "__main__":
    key = jax.random.PRNGKey(0)
    B, S, D, H = 2, 8, 32, 4

    k_param, k_q, k_k, k_v = jax.random.split(key, 4)
    mha = MultiHeadAttention(D, H, k_param, output_attentions=True)

    q_in = jax.random.normal(k_q, (B, S, D), jnp.float32)
    k_in = jax.random.normal(k_k, (B, S, D), jnp.float32)
    v_in = jax.random.normal(k_v, (B, S, D), jnp.float32)
    # CTRL-style causal mask: 1 above the diagonal, broadcast over batch/heads
    mask = jnp.triu(jnp.ones((S, S), jnp.float32), k=1)

    # Path 1: output_attentions=True (full-softmax kernel, writes weights)
    output, present, attn = mha(v_in, k_in, q_in, mask)
    output = jax.block_until_ready(output)
    present = jax.block_until_ready(present)
    attn = jax.block_until_ready(attn)

    # Path 2: output_attentions=False (KV-tiled online-softmax kernel)
    mha.output_attentions = False
    output_f, present_f = mha(v_in, k_in, q_in, mask)
    output_f = jax.block_until_ready(output_f)
    mha.output_attentions = True

    ref_out, ref_present, ref_attn = reference_forward(mha, v_in, k_in, q_in, mask)
    assert jnp.allclose(output, ref_out, atol=1e-4), "output mismatch"
    assert jnp.allclose(present, ref_present, atol=1e-4), "present mismatch"
    assert jnp.allclose(attn, ref_attn, atol=1e-4), "attention weights mismatch"
    assert jnp.allclose(output_f, ref_out, atol=1e-4), "flash output mismatch"
    assert jnp.allclose(present_f, ref_present, atol=1e-4), "flash present mismatch"

    print("KERNEL_OK")
</pallas_src>

<mosaic_0001>
module attributes {stable_mosaic.version = 11 : i64} {
  func.func @_qkv_kernel(%arg0: i32, %arg1: i32, %arg2: memref<16x32xf32, #tpu.memory_space<vmem>>, %arg3: memref<16x32xf32, #tpu.memory_space<vmem>>, %arg4: memref<16x32xf32, #tpu.memory_space<vmem>>, %arg5: memref<32x32xf32, #tpu.memory_space<vmem>>, %arg6: memref<32x32xf32, #tpu.memory_space<vmem>>, %arg7: memref<32x32xf32, #tpu.memory_space<vmem>>, %arg8: memref<1x32xf32, #tpu.memory_space<vmem>>, %arg9: memref<1x32xf32, #tpu.memory_space<vmem>>, %arg10: memref<1x32xf32, #tpu.memory_space<vmem>>, %arg11: memref<16x32xf32, #tpu.memory_space<vmem>>, %arg12: memref<16x32xf32, #tpu.memory_space<vmem>>, %arg13: memref<16x32xf32, #tpu.memory_space<vmem>>) attributes {dimension_semantics = [#tpu.dimension_semantics<parallel>, #tpu.dimension_semantics<parallel>], iteration_bounds = array<i64: 1, 1>, scalar_prefetch = 0 : i64, scratch_operands = 0 : i64, tpu.core_type = #tpu.core_type<tc>, window_params = [{transform_indices = @transform_0, window_bounds = array<i64: 16, 32>}, {transform_indices = @transform_1, window_bounds = array<i64: 16, 32>}, {transform_indices = @transform_2, window_bounds = array<i64: 16, 32>}, {transform_indices = @transform_3, window_bounds = array<i64: 32, 32>}, {transform_indices = @transform_4, window_bounds = array<i64: 32, 32>}, {transform_indices = @transform_5, window_bounds = array<i64: 32, 32>}, {transform_indices = @transform_6, window_bounds = array<i64: 1, 32>}, {transform_indices = @transform_7, window_bounds = array<i64: 1, 32>}, {transform_indices = @transform_8, window_bounds = array<i64: 1, 32>}, {transform_indices = @transform_9, window_bounds = array<i64: 16, 32>}, {transform_indices = @transform_10, window_bounds = array<i64: 16, 32>}, {transform_indices = @transform_11, window_bounds = array<i64: 16, 32>}]} {
    %c0 = arith.constant 0 : index
    %c0_0 = arith.constant 0 : index
    %0 = vector.load %arg2[%c0, %c0_0] : memref<16x32xf32, #tpu.memory_space<vmem>>, vector<16x32xf32>
    %c0_1 = arith.constant 0 : index
    %c0_2 = arith.constant 0 : index
    %1 = vector.load %arg5[%c0_1, %c0_2] : memref<32x32xf32, #tpu.memory_space<vmem>>, vector<32x32xf32>
    %cst = arith.constant dense<0.000000e+00> : vector<16x32xf32>
    %2 = tpu.matmul %0, %1, %cst {dimension_numbers = #tpu.dot_dimension_numbers<[1], [0], [0], [1], [0, 0, 1, 1], [], []>} : vector<16x32xf32>, vector<32x32xf32>, vector<16x32xf32> -> vector<16x32xf32>
    %c0_3 = arith.constant 0 : index
    %c0_4 = arith.constant 0 : index
    %3 = vector.load %arg8[%c0_3, %c0_4] : memref<1x32xf32, #tpu.memory_space<vmem>>, vector<1x32xf32>
    %4 = vector.broadcast %3 : vector<1x32xf32> to vector<16x32xf32>
    %5 = arith.addf %2, %4 : vector<16x32xf32>
    %c0_5 = arith.constant 0 : index
    %c0_6 = arith.constant 0 : index
    %6 = vector.load %arg11[%c0_5, %c0_6] : memref<16x32xf32, #tpu.memory_space<vmem>>, vector<16x32xf32>
    tpu.vector_store %arg11[%c0_5, %c0_6], %5 {strides = array<i32>} : memref<16x32xf32, #tpu.memory_space<vmem>>, vector<16x32xf32>,
    %c0_7 = arith.constant 0 : index
    %c0_8 = arith.constant 0 : index
    %7 = vector.load %arg3[%c0_7, %c0_8] : memref<16x32xf32, #tpu.memory_space<vmem>>, vector<16x32xf32>
    %c0_9 = arith.constant 0 : index
    %c0_10 = arith.constant 0 : index
    %8 = vector.load %arg6[%c0_9, %c0_10] : memref<32x32xf32, #tpu.memory_space<vmem>>, vector<32x32xf32>
    %cst_11 = arith.constant dense<0.000000e+00> : vector<16x32xf32>
    %9 = tpu.matmul %7, %8, %cst_11 {dimension_numbers = #tpu.dot_dimension_numbers<[1], [0], [0], [1], [0, 0, 1, 1], [], []>} : vector<16x32xf32>, vector<32x32xf32>, vector<16x32xf32> -> vector<16x32xf32>
    %c0_12 = arith.constant 0 : index
    %c0_13 = arith.constant 0 : index
    %10 = vector.load %arg9[%c0_12, %c0_13] : memref<1x32xf32, #tpu.memory_space<vmem>>, vector<1x32xf32>
    %11 = vector.broadcast %10 : vector<1x32xf32> to vector<16x32xf32>
    %12 = arith.addf %9, %11 : vector<16x32xf32>
    %c0_14 = arith.constant 0 : index
    %c0_15 = arith.constant 0 : index
    %13 = vector.load %arg12[%c0_14, %c0_15] : memref<16x32xf32, #tpu.memory_space<vmem>>, vector<16x32xf32>
    tpu.vector_store %arg12[%c0_14, %c0_15], %12 {strides = array<i32>} : memref<16x32xf32, #tpu.memory_space<vmem>>, vector<16x32xf32>,
    %c0_16 = arith.constant 0 : index
    %c0_17 = arith.constant 0 : index
    %14 = vector.load %arg4[%c0_16, %c0_17] : memref<16x32xf32, #tpu.memory_space<vmem>>, vector<16x32xf32>
    %c0_18 = arith.constant 0 : index
    %c0_19 = arith.constant 0 : index
    %15 = vector.load %arg7[%c0_18, %c0_19] : memref<32x32xf32, #tpu.memory_space<vmem>>, vector<32x32xf32>
    %cst_20 = arith.constant dense<0.000000e+00> : vector<16x32xf32>
    %16 = tpu.matmul %14, %15, %cst_20 {dimension_numbers = #tpu.dot_dimension_numbers<[1], [0], [0], [1], [0, 0, 1, 1], [], []>} : vector<16x32xf32>, vector<32x32xf32>, vector<16x32xf32> -> vector<16x32xf32>
    %c0_21 = arith.constant 0 : index
    %c0_22 = arith.constant 0 : index
    %17 = vector.load %arg10[%c0_21, %c0_22] : memref<1x32xf32, #tpu.memory_space<vmem>>, vector<1x32xf32>
    %18 = vector.broadcast %17 : vector<1x32xf32> to vector<16x32xf32>
    %19 = arith.addf %16, %18 : vector<16x32xf32>
    %c0_23 = arith.constant 0 : index
    %c0_24 = arith.constant 0 : index
    %20 = vector.load %arg13[%c0_23, %c0_24] : memref<16x32xf32, #tpu.memory_space<vmem>>, vector<16x32xf32>
    tpu.vector_store %arg13[%c0_23, %c0_24], %19 {strides = array<i32>} : memref<16x32xf32, #tpu.memory_space<vmem>>, vector<16x32xf32>,
    return
  }
  func.func @transform_0(%arg0: i32, %arg1: i32) -> (i32, i32) {
    %c0_i32 = arith.constant 0 : i32
    %c0_i32_0 = arith.constant 0 : i32
    return %arg0, %c0_i32 : i32, i32
  }
  func.func @transform_1(%arg0: i32, %arg1: i32) -> (i32, i32) {
    %c0_i32 = arith.constant 0 : i32
    %c0_i32_0 = arith.constant 0 : i32
    return %arg0, %c0_i32 : i32, i32
  }
  func.func @transform_2(%arg0: i32, %arg1: i32) -> (i32, i32) {
    %c0_i32 = arith.constant 0 : i32
    %c0_i32_0 = arith.constant 0 : i32
    return %arg0, %c0_i32 : i32, i32
  }
  func.func @transform_3(%arg0: i32, %arg1: i32) -> (i32, i32) {
    %c0_i32 = arith.constant 0 : i32
    %c0_i32_0 = arith.constant 0 : i32
    return %c0_i32, %arg1 : i32, i32
  }
  func.func @transform_4(%arg0: i32, %arg1: i32) -> (i32, i32) {
    %c0_i32 = arith.constant 0 : i32
    %c0_i32_0 = arith.constant 0 : i32
    return %c0_i32, %arg1 : i32, i32
  }
  func.func @transform_5(%arg0: i32, %arg1: i32) -> (i32, i32) {
    %c0_i32 = arith.constant 0 : i32
    %c0_i32_0 = arith.constant 0 : i32
    return %c0_i32, %arg1 : i32, i32
  }
  func.func @transform_6(%arg0: i32, %arg1: i32) -> (i32, i32) {
    %c0_i32 = arith.constant 0 : i32
    %c0_i32_0 = arith.constant 0 : i32
    return %c0_i32, %arg1 : i32, i32
  }
  func.func @transform_7(%arg0: i32, %arg1: i32) -> (i32, i32) {
    %c0_i32 = arith.constant 0 : i32
    %c0_i32_0 = arith.constant 0 : i32
    return %c0_i32, %arg1 : i32, i32
  }
  func.func @transform_8(%arg0: i32, %arg1: i32) -> (i32, i32) {
    %c0_i32 = arith.constant 0 : i32
    %c0_i32_0 = arith.constant 0 : i32
    return %c0_i32, %arg1 : i32, i32
  }
  func.func @transform_9(%arg0: i32, %arg1: i32) -> (i32, i32) {
    %c0_i32 = arith.constant 0 : i32
    return %arg0, %arg1 : i32, i32
  }
  func.func @transform_10(%arg0: i32, %arg1: i32) -> (i32, i32) {
    %c0_i32 = arith.constant 0 : i32
    return %arg0, %arg1 : i32, i32
  }
  func.func @transform_11(%arg0: i32, %arg1: i32) -> (i32, i32) {
    %c0_i32 = arith.constant 0 : i32
    return %arg0, %arg1 : i32, i32
  }
}

</mosaic_0001>

<bundles_post_ra>
// kernel: tpu_custom_call.1
= control target key start
LH: loop header
LB: loop body
LE: loop exit
PB: predicated region body
PF: predicated region fallthrough
CT: control target
= control target key end

     0   :  { %17 = vsyncpa [#allocation3], 0  ;;  %s868_s0 = inlined_call_operand.hbm [shape: f32[16,32], index: 0, kind: input, shape index: {}]   ;;  %s869_s1 = inlined_call_operand.hbm [shape: f32[16,32], index: 1, kind: input, shape index: {}]   ;;  %s870_s2 = inlined_call_operand.hbm [shape: f32[16,32], index: 2, kind: input, shape index: {}]   ;;  %s871_s3 = inlined_call_operand.hbm [shape: f32[32,32], index: 3, kind: input, shape index: {}]   ;;  %s872_s4 = inlined_call_operand.hbm [shape: f32[32,32], index: 4, kind: input, shape index: {}]   ;;  %s873_s5 = inlined_call_operand.hbm [shape: f32[32,32], index: 5, kind: input, shape index: {}]   ;;  %s874_s6 = inlined_call_operand.vmem [shape: f32[1,32], index: 6, kind: input, shape index: {}]   ;;  %s875_s7 = inlined_call_operand.vmem [shape: f32[1,32], index: 7, kind: input, shape index: {}]   ;;  %s876_s8 = inlined_call_operand.vmem [shape: f32[1,32], index: 8, kind: input, shape index: {}]   ;;  %s877_s9 = inlined_call_operand.hbm [shape: f32[16,32], index: 9, kind: output, shape index: {0}]   ;;  %s878_s10 = inlined_call_operand.hbm [shape: f32[16,32], index: 10, kind: output, shape index: {1}]   ;;  %s879_s11 = inlined_call_operand.hbm [shape: f32[16,32], index: 11, kind: output, shape index: {2}]  }
   0x1   :  { %18 = vsyncpa [#allocation6], 0 }
   0x2   :  { %19 = vsyncpa [#allocation9], 0 }
   0x3   :  { %20 = vsyncpa [#allocation12], 0 }
   0x4   :  { %21 = vsyncpa [#allocation4], 0 }
   0x5   :  { %22 = vsyncpa [#allocation15], 0  ;;  %s722_s17 = smov [#allocation5]   ;;  %s723_s19 = smov [#allocation8]  }
   0x6   :  { %s40_s18 = sshll.u32 %s722_s17, 4  ;;  %s64_s20 = sshll.u32 %s723_s19, 4  ;;  %s41_s18 = int_to_ptr.vmem [resolvable:$true] %s40_s18  ;;  %s65_s20 = int_to_ptr.vmem [resolvable:$true] %s64_s20 }
   0x7   :  { %s538_s21 = scalar_lea.vmem %s41_s18, 256  ;;  %p543_p1 = scmp.lt.s32.totalorder %s41_s18, %s41_s18 }
   0x8   :  { %p539_p0 = scmp.ne.s32.totalorder %s41_s18, %s538_s21  ;;  %p544_p2 = scmp.lt.s32.totalorder %s538_s21, %s538_s21 }
   0xa   :  { %p545_p3 = por %p544_p2, %p543_p1 }
   0xc   :  { %p546_p4 = pnand %p545_p3, %p539_p0 }
   0xe   :  { %549 = shalt.err (!%p546_p4)
}
   0xf   :  { %s724_s22 = smov 128   ;;  %s725_s23 = smov 8  }
  0x10   :  { %46 = dma.hbm_to_vmem [thread:$0]  %s869_s1, 256, %s41_s18, [#allocation6], %s724_s22, %s724_s22, %s725_s23  }
  0x11   :  { %s558_s26 = scalar_lea.vmem %s65_s20, 512  ;;  %p563_p6 = scmp.lt.s32.totalorder %s65_s20, %s65_s20 }
  0x12   :  { %p559_p5 = scmp.ne.s32.totalorder %s65_s20, %s558_s26  ;;  %p564_p7 = scmp.lt.s32.totalorder %s558_s26, %s558_s26 }
  0x14   :  { %p565_p8 = por %p564_p7, %p563_p6 }
  0x16   :  { %p566_p9 = pnand %p565_p8, %p559_p5 }
  0x18   :  { %569 = shalt.err (!%p566_p9)
}
  0x19   :  { %70 = dma.hbm_to_vmem [thread:$0]  %s871_s3, 512, %s65_s20, [#allocation9], %s724_s22, %s724_s22, %s725_s23  }
  0x1a   :  { %s726_s29 = smov [#allocation2]   ;;  %s727_s12 = smov [#allocation7]  }
  0x1b   :  { %s28_s30 = sshll.u32 %s726_s29, 4  ;;  %s52_s13 = sshll.u32 %s727_s12, 4  ;;  %s29_s30 = int_to_ptr.vmem [resolvable:$true] %s28_s30  ;;  %s53_s13 = int_to_ptr.vmem [resolvable:$true] %s52_s13 }
  0x1c   :  { %s578_s1 = scalar_lea.vmem %s29_s30, 256  ;;  %p583_p11 = scmp.lt.s32.totalorder %s29_s30, %s29_s30 }
  0x1d   :  { %p579_p10 = scmp.ne.s32.totalorder %s29_s30, %s578_s1  ;;  %p584_p12 = scmp.lt.s32.totalorder %s578_s1, %s578_s1 }
  0x1f   :  { %p585_p13 = por %p584_p12, %p583_p11 }
  0x21   :  { %p586_p0 = pnand %p585_p13, %p579_p10 }
  0x23   :  { %589 = shalt.err (!%p586_p0)
}
  0x24   :  { %34 = dma.hbm_to_vmem [thread:$0]  %s868_s0, 256, %s29_s30, [#allocation3], %s724_s22, %s724_s22, %s725_s23  }
  0x25   :  { %s598_s3 = scalar_lea.vmem %s53_s13, 256  ;;  %p603_p2 = scmp.lt.s32.totalorder %s53_s13, %s53_s13 }
  0x26   :  { %p599_p1 = scmp.ne.s32.totalorder %s53_s13, %s598_s3  ;;  %p604_p3 = scmp.lt.s32.totalorder %s598_s3, %s598_s3 }
  0x28   :  { %p605_p4 = por %p604_p3, %p603_p2 }
  0x2a   :  { %p606_p5 = pnand %p605_p4, %p599_p1 }
  0x2c   :  { %609 = shalt.err (!%p606_p5)
}
  0x2d   :  { %58 = dma.hbm_to_vmem [thread:$0]  %s870_s2, 256, %s53_s13, [#allocation6], %s724_s22, %s724_s22, %s725_s23  }
  0x2e   :  { %s728_s18 = smov [#allocation10]   ;;  %s729_s20 = smov [#allocation11]  }
  0x2f   :  { %s76_s19 = sshll.u32 %s728_s18, 4  ;;  %s88_s21 = sshll.u32 %s729_s20, 4  ;;  %s77_s19 = int_to_ptr.vmem [resolvable:$true] %s76_s19  ;;  %s89_s21 = int_to_ptr.vmem [resolvable:$true] %s88_s21 }
  0x30   :  { %s618_s0 = scalar_lea.vmem %s77_s19, 512  ;;  %p623_p7 = scmp.lt.s32.totalorder %s77_s19, %s77_s19 }
  0x31   :  { %p619_p6 = scmp.ne.s32.totalorder %s77_s19, %s618_s0  ;;  %p624_p8 = scmp.lt.s32.totalorder %s618_s0, %s618_s0 }
  0x33   :  { %p625_p9 = por %p624_p8, %p623_p7 }
  0x35   :  { %p626_p10 = pnand %p625_p9, %p619_p6 }
  0x37   :  { %629 = shalt.err (!%p626_p10)
}
  0x38   :  { %82 = dma.hbm_to_vmem [thread:$0]  %s872_s4, 512, %s77_s19, [#allocation9], %s724_s22, %s724_s22, %s725_s23  }
  0x39   :  { %s638_s2 = scalar_lea.vmem %s89_s21, 512  ;;  %p643_p12 = scmp.lt.s32.totalorder %s89_s21, %s89_s21 }
  0x3a   :  { %p639_p11 = scmp.ne.s32.totalorder %s89_s21, %s638_s2  ;;  %p644_p13 = scmp.lt.s32.totalorder %s638_s2, %s638_s2 }
  0x3c   :  { %p645_p0 = por %p644_p13, %p643_p12 }
  0x3e   :  { %p646_p1 = pnand %p645_p0, %p639_p11 }
  0x40   :  { %649 = shalt.err (!%p646_p1)
}
  0x41   :  { %94 = dma.hbm_to_vmem [thread:$0]  %s873_s5, 512, %s89_s21, [#allocation12], %s724_s22, %s724_s22, %s725_s23  }
  0x42   :  { %710 = dma.done.wait [#allocation3], 256  }
  0x43   :  { %711 = vsyncadd [#allocation3], 4294967040 }
  0x44   :  { %712 = dma.done.wait [#allocation6], 512  }
  0x45   :  { %713 = vsyncadd [#allocation6], 4294966784 }
  0x46   :  { %714 = dma.done.wait [#allocation9], 1024  }
  0x47   :  { %715 = vsyncadd [#allocation9], 4294966272 }
  0x48   :  { %716 = dma.done.wait [#allocation12], 512  }
  0x49   :  { %717 = vsyncadd [#allocation12], 4294966784  ;;  %v124_v0 = vld [vmem:[#allocation8 + $0x18] sm:$0xff]  ;;  %v123_v1 = vld [vmem:[#allocation8 + $0x10] sm:$0xff]  ;;  %vm132_vm0 = vcmask 261120   ;;  %s730_s28 = smov [#allocation13]  }
  0x4a   :  { %486 = vmatprep.subr.mxu0 %v124_v0  ;;  %v221_v2 = vld [vmem:[#allocation10 + $0x18] sm:$0xff]  ;;  %v119_v3 = vld [vmem:[#allocation2] sm:$0xff]  ;;  %v122_v4 = vld [vmem:[#allocation8 + $0x8] sm:$0xff]  ;;  %s413_s29 = sshll.u32 %s730_s28, 4  ;;  %s731_s13 = smov [#allocation14]   ;;  %s414_s29 = int_to_ptr.vmem [resolvable:$true] %s413_s29 }
  0x4b   :  { %487 = vmatpush3.msra.mxu0 %v124_v0  ;;  %497 = vmatprep.subr.mxu1 %v221_v2  ;;  %v220_v5 = vld [vmem:[#allocation10 + $0x10] sm:$0xff]  ;;  %v121_v6 = vld [vmem:[#allocation8] sm:$0xff]  ;;  %v219_v7 = vld [vmem:[#allocation10 + $0x8] sm:$0xff]  ;;  %s425_s1 = sshll.u32 %s731_s13, 4  ;;  %s650_s15 = scalar_lea.vmem %s414_s29, 256  ;;  %s426_s1 = int_to_ptr.vmem [resolvable:$true] %s425_s1 }
  0x4c   :  { %488 = vmatprep.subr.mxu0 %v123_v1  ;;  %498 = vmatpush3.msra.mxu1 %v221_v2  ;;  %v120_v8 = vld [vmem:[#allocation2 + $0x8] sm:$0xff]  ;;  %v218_v10 = vld [vmem:[#allocation10] sm:$0xff]  ;;  %v316_v11 = vld [vmem:[#allocation11 + $0x10] sm:$0xff]  ;;  %p651_p2 = scmp.ne.s32.totalorder %s414_s29, %s650_s15  ;;  %p655_p3 = scmp.lt.s32.totalorder %s414_s29, %s414_s29 }
  0x4d   :  { %489 = vmatpush3.msra.mxu0 %v123_v1  ;;  %494 = vmatprep.mubr.msk.f32.mxu0 %vm132_vm0, %v119_v3  ;;  %v317_v9 = vld [vmem:[#allocation11 + $0x18] sm:$0xff]  ;;  %v216_v12 = vld [vmem:[#allocation5] sm:$0xff]  ;;  %v315_v13 = vld [vmem:[#allocation11 + $0x8] sm:$0xff]  ;;  %p656_p4 = scmp.lt.s32.totalorder %s650_s15, %s650_s15 }
  0x4e   :  { %490 = vmatprep.subr.mxu0 %v122_v4  ;;  %499 = vmatprep.subr.mxu1 %v220_v5  ;;  %v217_v14 = vld [vmem:[#allocation5 + $0x8] sm:$0xff]  ;;  %v312_v15 = vld [vmem:[#allocation7] sm:$0xff]  ;;  %v314_v16 = vld [vmem:[#allocation11] sm:$0xff] }
  0x4f   :  { %491 = vmatpush3.msra.mxu0 %v122_v4  ;;  %500 = vmatpush3.msra.mxu1 %v220_v5  ;;  %v313_v17 = vld [vmem:[#allocation7 + $0x8] sm:$0xff]  ;;  %v459_v18 = vld [vmem:[%s874_s6] ss:$0 sm:$0xff]  ;;  %p657_p5 = por %p656_p4, %p655_p3 }
  0x50   :  { %492 = vmatprep.subr.mxu0 %v121_v6  ;;  %501 = vmatprep.subr.mxu1 %v219_v7  ;;  %v462_v22 = vld [vmem:[%s875_s7] ss:$0 sm:$0xff] }
  0x51   :  { %493 = vmatpush3.msra.mxu0 %v121_v6  ;;  %502 = vmatpush3.msra.mxu1 %v219_v7  ;;  %v465_v26 = vld [vmem:[%s876_s8] ss:$0 sm:$0xff]  ;;  %p658_p6 = pnand %p657_p5, %p651_p2 }
  0x52   :  { %495 = vmatmul.mubr.msk.f32.vlgmr.msra.gmra.mxu0 %vm132_vm0, %v120_v8  ;;  %508 = vmatprep.subr.mxu0 %v317_v9 }
  0x53   :  { %509 = vmatpush3.msra.mxu0 %v317_v9  ;;  %503 = vmatprep.subr.mxu1 %v218_v10 }
  0x54   :  { %510 = vmatprep.subr.mxu0 %v316_v11  ;;  %504 = vmatpush3.msra.mxu1 %v218_v10 }
  0x55   :  { %511 = vmatpush3.msra.mxu0 %v316_v11  ;;  %505 = vmatprep.mubr.msk.f32.mxu1 %vm132_vm0, %v216_v12 }
  0x56   :  { %512 = vmatprep.subr.mxu0 %v315_v13  ;;  %506 = vmatmul.mubr.msk.f32.vlgmr.msra.gmra.mxu1 %vm132_vm0, %v217_v14 }
  0x57   :  { %513 = vmatpush3.msra.mxu0 %v315_v13  ;;  %516 = vmatprep.mubr.msk.f32.mxu0 %vm132_vm0, %v312_v15 }
  0x58   :  { %514 = vmatprep.subr.mxu0 %v314_v16 }
  0x59   :  { %515 = vmatpush3.msra.mxu0 %v314_v16 }
  0x5a   :  { %517 = vmatmul.mubr.msk.f32.vlgmr.msra.gmra.mxu0 %vm132_vm0, %v313_v17 }
 0x112   :  { %v496_v19 = vpop.f32.mrf.mxu0 }
 0x113   :  { %v211_v20 = vadd.f32 %v496_v19, %v459_v18 }
 0x114   :  { %v205_v21 = vpop.f32.mrf.mxu0 }
 0x115   :  { %215 = vst.msk [vmem:[#allocation13 + $0x8] sm:$0xff] %vm132_vm0, %v211_v20  ;;  %v206_v23 = vadd.f32 %v459_v18, %v205_v21 }
 0x116   :  { %v507_v24 = vpop.f32.mrf.mxu1 }
 0x117   :  { %214 = vst.msk [vmem:[#allocation13] sm:$0xff] %vm132_vm0, %v206_v23  ;;  %v307_v25 = vadd.f32 %v507_v24, %v462_v22 }
 0x118   :  { %v301_v27 = vpop.f32.mrf.mxu1 }
 0x119   :  { %661 = shalt.err (!%p658_p6)
}
 0x11a   :  { %419 = dma.vmem_to_hbm [thread:$0]  %s414_s29, 256, %s877_s9, [#allocation4], %s724_s22, %s724_s22, %s725_s23   ;;  %311 = vst.msk [vmem:[#allocation14 + $0x8] sm:$0xff] %vm132_vm0, %v307_v25  ;;  %v302_v28 = vadd.f32 %v462_v22, %v301_v27  ;;  %v518_v29 = vpop.f32.mrf.mxu0 }
 0x11b   :  { %s732_s8 = smov [#allocation16]   ;;  %v403_v30 = vadd.f32 %v518_v29, %v465_v26  ;;  %s670_s17 = scalar_lea.vmem %s426_s1, 256 }
 0x11c   :  { %s437_s16 = sshll.u32 %s732_s8, 4  ;;  %310 = vst.msk [vmem:[#allocation14] sm:$0xff] %vm132_vm0, %v302_v28  ;;  %v397_v31 = vpop.f32.mrf.mxu0  ;;  %p671_p7 = scmp.ne.s32.totalorder %s426_s1, %s670_s17  ;;  %s438_s16 = int_to_ptr.vmem [resolvable:$true] %s437_s16 }
 0x11d   :  { %p675_p8 = scmp.lt.s32.totalorder %s426_s1, %s426_s1  ;;  %p676_p9 = scmp.lt.s32.totalorder %s670_s17, %s670_s17 }
 0x11f   :  { %p677_p10 = por %p676_p9, %p675_p8 }
 0x121   :  { %p678_p11 = pnand %p677_p10, %p671_p7 }
 0x123   :  { %681 = shalt.err (!%p678_p11)
}
 0x124   :  { %431 = dma.vmem_to_hbm [thread:$0]  %s426_s1, 256, %s878_s10, [#allocation15], %s724_s22, %s724_s22, %s725_s23   ;;  %407 = vst.msk [vmem:[#allocation16 + $0x8] sm:$0xff] %vm132_vm0, %v403_v30  ;;  %v398_v32 = vadd.f32 %v465_v26, %v397_v31 }
 0x125   :  { %s690_s19 = scalar_lea.vmem %s438_s16, 256  ;;  %p695_p13 = scmp.lt.s32.totalorder %s438_s16, %s438_s16 }
 0x126   :  { %406 = vst.msk [vmem:[#allocation16] sm:$0xff] %vm132_vm0, %v398_v32  ;;  %p691_p12 = scmp.ne.s32.totalorder %s438_s16, %s690_s19  ;;  %p696_p0 = scmp.lt.s32.totalorder %s690_s19, %s690_s19 }
 0x128   :  { %p697_p1 = por %p696_p0, %p695_p13 }
 0x12a   :  { %p698_p2 = pnand %p697_p1, %p691_p12 }
 0x12c   :  { %701 = shalt.err (!%p698_p2)
}
 0x12d   :  { %443 = dma.vmem_to_hbm [thread:$0]  %s438_s16, 256, %s879_s11, [#allocation15], %s724_s22, %s724_s22, %s725_s23  }
 0x12e   :  { %718 = dma.done.wait [#allocation4], 256  }
 0x12f   :  { %719 = vsyncadd [#allocation4], 4294967040 }
 0x130   :  { %720 = dma.done.wait [#allocation15], 512  }
 0x131   :  { %721 = vsyncadd [#allocation15], 4294966784 }
 0x132   :  { %453 = vsyncpa [#allocation3], 1 }
 0x133   :  { %454 = vsyncpa [#allocation6], 1 }
 0x134   :  { %455 = vsyncpa [#allocation9], 1 }
 0x135   :  { %456 = vsyncpa [#allocation12], 1 }
 0x136   :  { %457 = vsyncpa [#allocation4], 1 }
 0x137   :  { %458 = vsyncpa [#allocation15], 1 }

</bundles_post_ra>
